<compile_context>
chip_gen: v6e
topology: v6e:2x2x1
jax: 0.10.0
libtpu: 0.0.40
codegen_flags: <defaults>
</compile_context>

<pallas_src>
import functools

import jax
import jax.numpy as jnp
from jax.experimental import pallas as pl
from jax.experimental.pallas import tpu as pltpu


def _round_up(x, m):
    return (x + m - 1) // m * m


def sage_layer_kernel(first_tile_ref, num_tiles_ref,          # scalar prefetch (SMEM)
                      m_ref, dst_ref, nf_ref, invd_ref,
                      wa_n_ref, wa_h_ref, ba_ref,
                      out_ref, acc_ref, *, tile_n):
    i = pl.program_id(0)    # node tile          (parallel)
    k = pl.program_id(1)    # edge-segment tile  (arbitrary / reduction)

    @pl.when(k == 0)
    def _():
        acc_ref[...] = jnp.zeros_like(acc_ref)

    # Only edge tiles overlapping this node tile's dst segment contribute
    # (edges are pre-sorted by dst); overflow steps are skipped.
    @pl.when(k < num_tiles_ref[i])
    def _():
        # (tile_n, 1) iota broadcast against (1, tile_e) dst ids -> one-hot mask.
        node_ids = i * tile_n + jax.lax.broadcasted_iota(jnp.int32, (tile_n, 1), 0)
        onehot = (node_ids == dst_ref[...]).astype(jnp.bfloat16)   # exact in bf16
        # scatter-sum of precomputed messages via MXU matmul, f32 accumulation.
        acc_ref[...] += jnp.dot(onehot, m_ref[...],
                                preferred_element_type=jnp.float32)

    @pl.when(k == pl.num_programs(1) - 1)
    def _():
        # mean over in-edges: precomputed inverse in-degree (0 for isolated
        # nodes -> h_neigh = 0, matching DGL).
        h_neigh = acc_ref[...] * invd_ref[...]
        z = (jnp.dot(nf_ref[...], wa_n_ref[...], preferred_element_type=jnp.float32)
             + jnp.dot(h_neigh.astype(jnp.bfloat16), wa_h_ref[...],
                       preferred_element_type=jnp.float32)
             + ba_ref[...])
        out_ref[...] = jnp.maximum(z, 0.0)


def sage_layer(nfeats, efeats, src, dst, W_msg, b_msg, W_apply, b_apply,
               *, tile_n=512, tile_e=2048, lane=128):
    """nfeats: (N, 1, ndim_in), efeats: (E, 1, edims), src/dst: (E,) int32.
    Returns (N, 1, ndim_out) float32."""
    N, _, ndim_in = nfeats.shape
    E, _, edims = efeats.shape
    ndim_out = W_msg.shape[0]
    d_out_p = _round_up(ndim_out, lane)          # lane-dense output feature dim

    # --- tile sizes ----------------------------------------------------------
    # Keep >= 2 node tiles for small graphs so v7x's two TensorCores both get
    # work; keep tile_e a multiple of 128.
    if _round_up(N, 8) <= tile_n:
        tile_n = max(8, _round_up((N + 1) // 2, 8))
    tile_e = max(lane, min(tile_e, _round_up(max(E, 1), lane)))
    n_pad = _round_up(N, tile_n)
    e_pad = _round_up(max(E, 1), tile_e)
    n_tiles_n = n_pad // tile_n
    n_tiles_e = e_pad // tile_e
    last_e = n_tiles_e - 1

    f32 = jnp.float32
    nf2 = nfeats.reshape(N, ndim_in).astype(f32)
    ef2 = efeats.reshape(E, edims).astype(f32)

    # --- sort edges by destination (contiguous per-node-tile segments) and
    #     hoist the per-edge message matmul (incl. b_msg) out of the kernel.
    order = jnp.argsort(dst)
    dst_s = dst[order].astype(jnp.int32)
    src_s = src[order]
    xedge = jnp.concatenate([nf2[src_s], ef2[order]], axis=-1)          # (E, Din+De)
    msgs = xedge @ W_msg.T.astype(f32) + b_msg.astype(f32)              # (E, Dout) f32
    msgs = jnp.pad(msgs, ((0, e_pad - E), (0, 0))).astype(jnp.bfloat16)

    # dst as a (1, E_pad) int32 vector; padded edges -> -1 (never matched).
    dst2 = jnp.pad(dst_s, (0, e_pad - E), constant_values=-1).reshape(1, e_pad)

    # per-node-tile segment -> edge-tile offsets, scalar-prefetched to SMEM.
    bounds = jnp.arange(n_tiles_n + 1, dtype=jnp.int32) * tile_n
    starts = jnp.searchsorted(dst_s, bounds[:-1], side="left").astype(jnp.int32)
    ends = jnp.searchsorted(dst_s, bounds[1:], side="left").astype(jnp.int32)
    first_tile = (starts // tile_e).astype(jnp.int32)
    num_tiles = jnp.where(ends > starts,
                          (ends + tile_e - 1) // tile_e - first_tile,
                          0).astype(jnp.int32)
    # data-dependent grid extent (computed eagerly; see TODO at top)
    max_k = max(1, int(jax.device_get(jnp.max(num_tiles))))

    nf_p = jnp.pad(nf2, ((0, n_pad - N), (0, 0))).astype(jnp.bfloat16)

    # Precomputed inverse in-degree (exact), 0 for isolated nodes.
    deg = jnp.zeros((N,), f32).at[dst].add(1.0)
    inv_deg = jnp.where(deg > 0, 1.0 / jnp.maximum(deg, 1.0), 0.0)
    inv_deg = jnp.pad(inv_deg, (0, n_pad - N)).reshape(n_pad, 1)

    # PyTorch Linear: y = x @ W.T + b ; split W_apply along the concat axis so
    # no in-kernel concat is needed; pad the OUTPUT dim to lane-dense 128.
    wa = W_apply.T.astype(f32)                                          # (Din+Dout, Dout)
    wa_n = jnp.pad(wa[:ndim_in],
                   ((0, 0), (0, d_out_p - ndim_out))).astype(jnp.bfloat16)   # (Din, Dp)
    wa_h = jnp.pad(wa[ndim_in:],
                   ((0, 0), (0, d_out_p - ndim_out))).astype(jnp.bfloat16)   # (Dout, Dp)
    ba = jnp.pad(b_apply.astype(f32), (0, d_out_p - ndim_out)).reshape(1, d_out_p)

    # Edge-tile index for grid step (i, k): clamp within the segment so skipped
    # steps re-use the previous block index (no extra DMA) and stay in bounds.
    def _edge_tile(i, k, ft, nt):
        kk = jnp.minimum(k, jnp.maximum(nt[i] - 1, 0))
        return jnp.minimum(ft[i] + kk, last_e)

    kernel = functools.partial(sage_layer_kernel, tile_n=tile_n)

    out = pl.pallas_call(
        kernel,
        out_shape=jax.ShapeDtypeStruct((n_pad, d_out_p), jnp.float32),
        grid_spec=pltpu.PrefetchScalarGridSpec(
            num_scalar_prefetch=2,
            grid=(n_tiles_n, max_k),
            in_specs=[
                # precomputed per-edge messages (bf16, ndim_out cols), streamed
                pl.BlockSpec((tile_e, ndim_out),
                             lambda i, k, ft, nt: (_edge_tile(i, k, ft, nt), 0)),
                # dst ids for the same edge tile
                pl.BlockSpec((1, tile_e),
                             lambda i, k, ft, nt: (0, _edge_tile(i, k, ft, nt))),
                pl.BlockSpec((tile_n, ndim_in), lambda i, k, ft, nt: (i, 0)),   # node feats
                pl.BlockSpec((tile_n, 1), lambda i, k, ft, nt: (i, 0)),         # 1/in-degree
                pl.BlockSpec((ndim_in, d_out_p), lambda i, k, ft, nt: (0, 0)),  # W_apply (node)
                pl.BlockSpec((ndim_out, d_out_p), lambda i, k, ft, nt: (0, 0)), # W_apply (neigh)
                pl.BlockSpec((1, d_out_p), lambda i, k, ft, nt: (0, 0)),        # b_apply
            ],
            out_specs=pl.BlockSpec((tile_n, d_out_p), lambda i, k, ft, nt: (i, 0)),
            scratch_shapes=[pltpu.VMEM((tile_n, ndim_out), jnp.float32)],
        ),
        compiler_params=pltpu.CompilerParams(
            dimension_semantics=("parallel", "arbitrary"),
            vmem_limit_bytes=32 * 1024 * 1024,
        ),
    )(first_tile, num_tiles, msgs, dst2, nf_p, inv_deg, wa_n, wa_h, ba)

    return out[:N, :ndim_out].reshape(N, 1, ndim_out)


def sage_layer_ref(nfeats, efeats, src, dst, W_msg, b_msg, W_apply, b_apply):
    """Pure-JAX f32 reference mirroring the PyTorch/DGL forward."""
    N, _, ndim_in = nfeats.shape
    E = efeats.shape[0]
    ndim_out = W_msg.shape[0]
    nf2 = nfeats.reshape(N, -1)
    ef2 = efeats.reshape(E, -1)
    x = jnp.concatenate([nf2[src], ef2], axis=-1)
    m = x @ W_msg.T + b_msg
    sums = jnp.zeros((N, ndim_out), jnp.float32).at[dst].add(m)
    cnts = jnp.zeros((N,), jnp.float32).at[dst].add(1.0)
    h_neigh = jnp.where(cnts[:, None] > 0,
                        sums / jnp.maximum(cnts[:, None], 1.0), 0.0)
    z = jnp.concatenate([nf2, h_neigh], axis=-1) @ W_apply.T + b_apply
    return jax.nn.relu(z).reshape(N, 1, ndim_out)


if __name__ == "__main__":
    key = jax.random.PRNGKey(0)
    N, E = 16, 40          # nodes, edges
    ndim_in, edims, ndim_out = 16, 8, 32

    ks = jax.random.split(key, 8)
    nfeats = jax.random.normal(ks[0], (N, 1, ndim_in), jnp.float32)
    efeats = jax.random.normal(ks[1], (E, 1, edims), jnp.float32)
    src = jax.random.randint(ks[2], (E,), 0, N, jnp.int32)
    dst = jax.random.randint(ks[3], (E,), 0, N, jnp.int32)

    # deterministic synthetic parameters (shapes per nn.Linear in __init__)
    W_msg = jax.random.normal(ks[4], (ndim_out, ndim_in + edims), jnp.float32) * 0.1
    b_msg = jax.random.normal(ks[5], (ndim_out,), jnp.float32) * 0.1
    W_apply = jax.random.normal(ks[6], (ndim_out, ndim_in + ndim_out), jnp.float32) * 0.1
    b_apply = jax.random.normal(ks[7], (ndim_out,), jnp.float32) * 0.1

    out = sage_layer(nfeats, efeats, src, dst, W_msg, b_msg, W_apply, b_apply)
    out = jax.block_until_ready(out)

    ref = sage_layer_ref(nfeats, efeats, src, dst, W_msg, b_msg, W_apply, b_apply)
    assert out.shape == (N, 1, ndim_out)
    # bf16 matmul operands with f32 accumulation -> loosened tolerance vs f32 ref
    assert jnp.allclose(out, ref, atol=3e-2, rtol=3e-2), "mismatch vs reference"
    print("KERNEL_OK")
</pallas_src>

<mosaic_0001>
module attributes {stable_mosaic.version = 11 : i64} {
  func.func @sage_layer_kernel(%arg0: i32, %arg1: i32, %arg2: memref<2xi32, #tpu.memory_space<smem>>, %arg3: memref<2xi32, #tpu.memory_space<smem>>, %arg4: memref<128x32xbf16, #tpu.memory_space<vmem>>, %arg5: memref<1x128xi32, #tpu.memory_space<vmem>>, %arg6: memref<8x16xbf16, #tpu.memory_space<vmem>>, %arg7: memref<8x1xf32, #tpu.memory_space<vmem>>, %arg8: memref<16x128xbf16, #tpu.memory_space<vmem>>, %arg9: memref<32x128xbf16, #tpu.memory_space<vmem>>, %arg10: memref<1x128xf32, #tpu.memory_space<vmem>>, %arg11: memref<8x128xf32, #tpu.memory_space<vmem>>, %arg12: memref<8x32xf32, #tpu.memory_space<vmem>>) attributes {dimension_semantics = [#tpu.dimension_semantics<parallel>, #tpu.dimension_semantics<arbitrary>], iteration_bounds = array<i64: 2, 1>, scalar_prefetch = 2 : i64, scratch_operands = 1 : i64, tpu.core_type = #tpu.core_type<tc>, window_params = [{transform_indices = @transform_0, window_bounds = array<i64: 128, 32>}, {transform_indices = @transform_1, window_bounds = array<i64: 1, 128>}, {transform_indices = @transform_2, window_bounds = array<i64: 8, 16>}, {transform_indices = @transform_3, window_bounds = array<i64: 8, 1>}, {pipeline_mode = #tpu.pipeline_mode<synchronous>, transform_indices = @transform_4, window_bounds = array<i64: 16, 128>}, {pipeline_mode = #tpu.pipeline_mode<synchronous>, transform_indices = @transform_5, window_bounds = array<i64: 32, 128>}, {pipeline_mode = #tpu.pipeline_mode<synchronous>, transform_indices = @transform_6, window_bounds = array<i64: 1, 128>}, {transform_indices = @transform_7, window_bounds = array<i64: 8, 128>}]} {
    %c0_i32 = arith.constant 0 : i32
    %0 = arith.cmpi eq, %arg1, %c0_i32 : i32
    %1 = arith.extui %0 : i1 to i32
    %c0_i32_0 = arith.constant 0 : i32
    %2 = arith.cmpi ne, %1, %c0_i32_0 : i32
    scf.if %2 {
      %cst = arith.constant 0.000000e+00 : f32
      %11 = vector.broadcast %cst : f32 to vector<8x32xf32>
      %c0 = arith.constant 0 : index
      %c0_4 = arith.constant 0 : index
      %12 = vector.load %arg12[%c0, %c0_4] : memref<8x32xf32, #tpu.memory_space<vmem>>, vector<8x32xf32>
      tpu.vector_store %arg12[%c0, %c0_4], %11 {strides = array<i32>} : memref<8x32xf32, #tpu.memory_space<vmem>>, vector<8x32xf32>,
    } else {
    }
    %3 = arith.index_cast %arg0 : i32 to index
    %4 = memref.load %arg3[%3] : memref<2xi32, #tpu.memory_space<smem>>
    %5 = arith.cmpi slt, %arg1, %4 : i32
    %6 = arith.extui %5 : i1 to i32
    %c0_i32_1 = arith.constant 0 : i32
    %7 = arith.cmpi ne, %6, %c0_i32_1 : i32
    scf.if %7 {
      %c8_i32 = arith.constant 8 : i32
      %11 = arith.muli %arg0, %c8_i32 : i32
      %12 = tpu.iota {dimensions = array<i32: 0>} : vector<8x1xi32>
      %13 = vector.broadcast %11 : i32 to vector<8x1xi32>
      %14 = arith.addi %13, %12 : vector<8x1xi32>
      %c0 = arith.constant 0 : index
      %c0_4 = arith.constant 0 : index
      %15 = vector.load %arg5[%c0, %c0_4] : memref<1x128xi32, #tpu.memory_space<vmem>>, vector<1x128xi32>
      %16 = vector.broadcast %14 : vector<8x1xi32> to vector<8x128xi32>
      %17 = vector.broadcast %15 : vector<1x128xi32> to vector<8x128xi32>
      %18 = arith.cmpi eq, %16, %17 : vector<8x128xi32>
      %19 = arith.extui %18 : vector<8x128xi1> to vector<8x128xi32>
      %20 = arith.sitofp %19 : vector<8x128xi32> to vector<8x128xf32>
      %21 = arith.truncf %20 : vector<8x128xf32> to vector<8x128xbf16>
      %c0_5 = arith.constant 0 : index
      %c0_6 = arith.constant 0 : index
      %22 = vector.load %arg12[%c0_5, %c0_6] : memref<8x32xf32, #tpu.memory_space<vmem>>, vector<8x32xf32>
      %c0_7 = arith.constant 0 : index
      %c0_8 = arith.constant 0 : index
      %23 = vector.load %arg4[%c0_7, %c0_8] : memref<128x32xbf16, #tpu.memory_space<vmem>>, vector<128x32xbf16>
      %cst = arith.constant dense<0.000000e+00> : vector<8x32xf32>
      %24 = tpu.matmul %21, %23, %cst {dimension_numbers = #tpu.dot_dimension_numbers<[1], [0], [0], [1], [0, 0, 1, 1], [], []>} : vector<8x128xbf16>, vector<128x32xbf16>, vector<8x32xf32> -> vector<8x32xf32>
      %25 = arith.addf %22, %24 : vector<8x32xf32>
      %c0_9 = arith.constant 0 : index
      %c0_10 = arith.constant 0 : index
      %26 = vector.load %arg12[%c0_9, %c0_10] : memref<8x32xf32, #tpu.memory_space<vmem>>, vector<8x32xf32>
      tpu.vector_store %arg12[%c0_9, %c0_10], %25 {strides = array<i32>} : memref<8x32xf32, #tpu.memory_space<vmem>>, vector<8x32xf32>,
    } else {
    }
    %c0_i32_2 = arith.constant 0 : i32
    %8 = arith.cmpi eq, %arg1, %c0_i32_2 : i32
    %9 = arith.extui %8 : i1 to i32
    %c0_i32_3 = arith.constant 0 : i32
    %10 = arith.cmpi ne, %9, %c0_i32_3 : i32
    scf.if %10 {
      %c0 = arith.constant 0 : index
      %c0_4 = arith.constant 0 : index
      %11 = vector.load %arg12[%c0, %c0_4] : memref<8x32xf32, #tpu.memory_space<vmem>>, vector<8x32xf32>
      %c0_5 = arith.constant 0 : index
      %c0_6 = arith.constant 0 : index
      %12 = vector.load %arg7[%c0_5, %c0_6] : memref<8x1xf32, #tpu.memory_space<vmem>>, vector<8x1xf32>
      %13 = vector.broadcast %12 : vector<8x1xf32> to vector<8x32xf32>
      %14 = arith.mulf %11, %13 : vector<8x32xf32>
      %c0_7 = arith.constant 0 : index
      %c0_8 = arith.constant 0 : index
      %15 = vector.load %arg6[%c0_7, %c0_8] : memref<8x16xbf16, #tpu.memory_space<vmem>>, vector<8x16xbf16>
      %c0_9 = arith.constant 0 : index
      %c0_10 = arith.constant 0 : index
      %16 = vector.load %arg8[%c0_9, %c0_10] : memref<16x128xbf16, #tpu.memory_space<vmem>>, vector<16x128xbf16>
      %cst = arith.constant dense<0.000000e+00> : vector<8x128xf32>
      %17 = tpu.matmul %15, %16, %cst {dimension_numbers = #tpu.dot_dimension_numbers<[1], [0], [0], [1], [0, 0, 1, 1], [], []>} : vector<8x16xbf16>, vector<16x128xbf16>, vector<8x128xf32> -> vector<8x128xf32>
      %18 = arith.truncf %14 : vector<8x32xf32> to vector<8x32xbf16>
      %c0_11 = arith.constant 0 : index
      %c0_12 = arith.constant 0 : index
      %19 = vector.load %arg9[%c0_11, %c0_12] : memref<32x128xbf16, #tpu.memory_space<vmem>>, vector<32x128xbf16>
      %cst_13 = arith.constant dense<0.000000e+00> : vector<8x128xf32>
      %20 = tpu.matmul %18, %19, %cst_13 {dimension_numbers = #tpu.dot_dimension_numbers<[1], [0], [0], [1], [0, 0, 1, 1], [], []>} : vector<8x32xbf16>, vector<32x128xbf16>, vector<8x128xf32> -> vector<8x128xf32>
      %21 = arith.addf %17, %20 : vector<8x128xf32>
      %c0_14 = arith.constant 0 : index
      %c0_15 = arith.constant 0 : index
      %22 = vector.load %arg10[%c0_14, %c0_15] : memref<1x128xf32, #tpu.memory_space<vmem>>, vector<1x128xf32>
      %23 = vector.broadcast %22 : vector<1x128xf32> to vector<8x128xf32>
      %24 = arith.addf %21, %23 : vector<8x128xf32>
      %cst_16 = arith.constant 0.000000e+00 : f32
      %25 = vector.broadcast %cst_16 : f32 to vector<8x128xf32>
      %26 = arith.maximumf %24, %25 : vector<8x128xf32>
      %c0_17 = arith.constant 0 : index
      %c0_18 = arith.constant 0 : index
      %27 = vector.load %arg11[%c0_17, %c0_18] : memref<8x128xf32, #tpu.memory_space<vmem>>, vector<8x128xf32>
      tpu.vector_store %arg11[%c0_17, %c0_18], %26 {strides = array<i32>} : memref<8x128xf32, #tpu.memory_space<vmem>>, vector<8x128xf32>,
    } else {
    }
    return
  }
  func.func @transform_0(%arg0: i32, %arg1: i32, %arg2: memref<2xi32, #tpu.memory_space<smem>>, %arg3: memref<2xi32, #tpu.memory_space<smem>>) -> (i32, i32) {
    %0 = arith.index_cast %arg0 : i32 to index
    %1 = memref.load %arg3[%0] : memref<2xi32, #tpu.memory_space<smem>>
    %c1_i32 = arith.constant 1 : i32
    %2 = arith.subi %1, %c1_i32 : i32
    %c0_i32 = arith.constant 0 : i32
    %3 = arith.maxsi %2, %c0_i32 : i32
    %4 = arith.minsi %arg1, %3 : i32
    %5 = arith.index_cast %arg0 : i32 to index
    %6 = memref.load %arg2[%5] : memref<2xi32, #tpu.memory_space<smem>>
    %7 = arith.addi %6, %4 : i32
    %c0_i32_0 = arith.constant 0 : i32
    %8 = arith.minsi %7, %c0_i32_0 : i32
    %c0_i32_1 = arith.constant 0 : i32
    %c0_i32_2 = arith.constant 0 : i32
    return %8, %c0_i32_1 : i32, i32
  }
  func.func @transform_1(%arg0: i32, %arg1: i32, %arg2: memref<2xi32, #tpu.memory_space<smem>>, %arg3: memref<2xi32, #tpu.memory_space<smem>>) -> (i32, i32) {
    %0 = arith.index_cast %arg0 : i32 to index
    %1 = memref.load %arg3[%0] : memref<2xi32, #tpu.memory_space<smem>>
    %c1_i32 = arith.constant 1 : i32
    %2 = arith.subi %1, %c1_i32 : i32
    %c0_i32 = arith.constant 0 : i32
    %3 = arith.maxsi %2, %c0_i32 : i32
    %4 = arith.minsi %arg1, %3 : i32
    %5 = arith.index_cast %arg0 : i32 to index
    %6 = memref.load %arg2[%5] : memref<2xi32, #tpu.memory_space<smem>>
    %7 = arith.addi %6, %4 : i32
    %c0_i32_0 = arith.constant 0 : i32
    %8 = arith.minsi %7, %c0_i32_0 : i32
    %c0_i32_1 = arith.constant 0 : i32
    %c0_i32_2 = arith.constant 0 : i32
    return %c0_i32_1, %8 : i32, i32
  }
  func.func @transform_2(%arg0: i32, %arg1: i32, %arg2: memref<2xi32, #tpu.memory_space<smem>>, %arg3: memref<2xi32, #tpu.memory_space<smem>>) -> (i32, i32) {
    %c0_i32 = arith.constant 0 : i32
    %c0_i32_0 = arith.constant 0 : i32
    return %arg0, %c0_i32 : i32, i32
  }
  func.func @transform_3(%arg0: i32, %arg1: i32, %arg2: memref<2xi32, #tpu.memory_space<smem>>, %arg3: memref<2xi32, #tpu.memory_space<smem>>) -> (i32, i32) {
    %c0_i32 = arith.constant 0 : i32
    %c0_i32_0 = arith.constant 0 : i32
    return %arg0, %c0_i32 : i32, i32
  }
  func.func @transform_4(%arg0: i32, %arg1: i32, %arg2: memref<2xi32, #tpu.memory_space<smem>>, %arg3: memref<2xi32, #tpu.memory_space<smem>>) -> (i32, i32) {
    %c0_i32 = arith.constant 0 : i32
    %c0_i32_0 = arith.constant 0 : i32
    %c0_i32_1 = arith.constant 0 : i32
    return %c0_i32, %c0_i32_0 : i32, i32
  }
  func.func @transform_5(%arg0: i32, %arg1: i32, %arg2: memref<2xi32, #tpu.memory_space<smem>>, %arg3: memref<2xi32, #tpu.memory_space<smem>>) -> (i32, i32) {
    %c0_i32 = arith.constant 0 : i32
    %c0_i32_0 = arith.constant 0 : i32
    %c0_i32_1 = arith.constant 0 : i32
    return %c0_i32, %c0_i32_0 : i32, i32
  }
  func.func @transform_6(%arg0: i32, %arg1: i32, %arg2: memref<2xi32, #tpu.memory_space<smem>>, %arg3: memref<2xi32, #tpu.memory_space<smem>>) -> (i32, i32) {
    %c0_i32 = arith.constant 0 : i32
    %c0_i32_0 = arith.constant 0 : i32
    %c0_i32_1 = arith.constant 0 : i32
    return %c0_i32, %c0_i32_0 : i32, i32
  }
  func.func @transform_7(%arg0: i32, %arg1: i32, %arg2: memref<2xi32, #tpu.memory_space<smem>>, %arg3: memref<2xi32, #tpu.memory_space<smem>>) -> (i32, i32) {
    %c0_i32 = arith.constant 0 : i32
    %c0_i32_0 = arith.constant 0 : i32
    return %arg0, %c0_i32 : i32, i32
  }
}

</mosaic_0001>

<bundles_post_ra>
// kernel: tpu_custom_call.1
= control target key start
LH: loop header
LB: loop body
LE: loop exit
PB: predicated region body
PF: predicated region fallthrough
CT: control target
= control target key end

     0   :  { %s1413_s0 = inlined_call_operand.vmem [shape: s32[2], index: 0, kind: input, shape index: {}]   ;;  %s1414_s2 = inlined_call_operand.vmem [shape: bf16[128,32], index: 2, kind: input, shape index: {}]   ;;  %s1415_s3 = inlined_call_operand.vmem [shape: s32[1,128], index: 3, kind: input, shape index: {}]   ;;  %s1416_s4 = inlined_call_operand.vmem [shape: bf16[16,16], index: 4, kind: input, shape index: {}]   ;;  %s1417_s5 = inlined_call_operand.vmem [shape: f32[16,1], index: 5, kind: input, shape index: {}]   ;;  %s1418_s6 = inlined_call_operand.vmem [shape: bf16[16,128], index: 6, kind: input, shape index: {}]   ;;  %s1419_s7 = inlined_call_operand.vmem [shape: bf16[32,128], index: 7, kind: input, shape index: {}]   ;;  %s1420_s8 = inlined_call_operand.vmem [shape: f32[1,128], index: 8, kind: input, shape index: {}]   ;;  %s1421_s9 = inlined_call_operand.hbm [shape: f32[16,128], index: 9, kind: output, shape index: {}]   ;;  %s1422_s1 = inlined_call_operand.vmem [shape: s32[2], index: 1, kind: input, shape index: {}]  }
   0x1   :  { %s14_s11 = sshll.u32 %s1413_s0, 4  ;;  %s18_s14 = sshll.u32 %s1422_s1, 4  ;;  %s15_s11 = int_to_ptr.vmem [resolvable:$true] %s14_s11  ;;  %s19_s14 = int_to_ptr.vmem [resolvable:$true] %s18_s14 }
   0x2   :  { %s1065_s15 = scalar_lea.vmem %s15_s11, 16  ;;  %p1070_p1 = scmp.lt.s32.totalorder %s15_s11, %s15_s11 }
   0x3   :  { %p1066_p0 = scmp.ne.s32.totalorder %s15_s11, %s1065_s15  ;;  %p1071_p2 = scmp.lt.s32.totalorder %s1065_s15, %s1065_s15 }
   0x5   :  { %p1072_p3 = por %p1071_p2, %p1070_p1 }
   0x7   :  { %p1073_p4 = pnand %p1072_p3, %p1066_p0 }
   0x9   :  { %1076 = shalt.err (!%p1073_p4)  }
   0xa   :  { %s1169_s16 = smov [#allocation4]   ;;  %s1077_s17 = scalar_lea.vmem %s19_s14, 16 }
   0xb   :  { %17 = dma.vmem_to_smem %s15_s11, 16, %s1169_s16, [#allocation3] }
   0xc   :  { %p1078_p5 = scmp.ne.s32.totalorder %s19_s14, %s1077_s17  ;;  %p1082_p6 = scmp.lt.s32.totalorder %s19_s14, %s19_s14 }
   0xd   :  { %p1083_p7 = scmp.lt.s32.totalorder %s1077_s17, %s1077_s17 }
   0xf   :  { %p1084_p8 = por %p1083_p7, %p1082_p6 }
  0x11   :  { %p1085_p9 = pnand %p1084_p8, %p1078_p5 }
  0x13   :  { %1088 = shalt.err (!%p1085_p9)  }
  0x14   :  { %s1170_s0 = smov [#allocation5]  }
  0x15   :  { %21 = dma.vmem_to_smem %s19_s14, 16, %s1170_s0, [#allocation3] }
  0x16   :  { %1139 = dma.done.wait [#allocation3], 32 }
  0x17   :  { %1140 = vsyncadd [#allocation3], 4294967264 }
  0x18   :  { %23 = sfence }
  0x19   :  { %24 = vsyncpa [#allocation7], 0 }
  0x1a   :  { %26 = vsyncpa [#allocation7 + $0x1], 0  ;;  %s1234_s1 = smov 0   ;;  %s1236_s18 = smov 0  }
  0x1b   :  { %s1238_s19 = smov 0   ;;  %s1240_s20 = smov 0  }
  0x1c   :  { %s1242_s21 = smov 0   ;;  %s1244_s22 = smov 0  }
  0x1d LB: > { %1428 = sst [smem:[#allocation10_spill]] %s1155_s19  ;;  %s874_s23 = sadd.s32 4294967295, %s1167_s22   ;;  %s1167_s22 = sphi %s1244_s22, %s32_s22   ;;  %s1163_s21 = sphi %s1242_s21, %s1440_s21   ;;  %s1159_s20 = sphi %s1240_s20, %s1439_s20   ;;  %s1155_s19 = sphi %s1238_s19, %s1443_s19   ;;  %s1151_s18 = sphi %s1236_s18, %s1442_s18   ;;  %s1147_s1 = sphi %s1234_s1, %s1441_s1  }
  0x1e   : > { %1429 = sst [smem:[#allocation11_spill]] %s1163_s21  ;;  %s875_s24 = sadd.s32 4294967294, %s1167_s22  }
  0x1f   : > { %s44_s25 = sadd.s32 1, %s1163_s21  ;;  %s258_s26 = sadd.s32 1, %s1155_s19 }
  0x20   : > { %p46_p10 = scmp.ge.s32.totalorder %s44_s25, 2  ;;  %p268_p11 = scmp.ne.s32.totalorder %s1155_s19, %s1151_s18 }
  0x21   : > { %p269_p12 = scmp.eq.s32.totalorder %s874_s23, 1  ;;  %p274_p13 = scmp.ne.s32.totalorder %s1151_s18, %s1147_s1 }
  0x22   : > { %s1445_s25 = smov (%p46_p10, %s44_s25), 0  ;;  %p275_p1 = scmp.eq.s32.totalorder %s875_s24, 1 }
  0x23   : > { %1430 = sst [smem:[#allocation12_spill]] %s1445_s25  ;;  %p1274_p0 = por %p269_p12, %p268_p11 }
  0x24   : > { %s255_s28 = ssub.s32 %s1163_s21, %s1445_s25  ;;  %p886_p2 = scmp.ge.s32.totalorder %s1167_s22, 1 }
  0x25   : > { %p256_p3 = scmp.eq.s32.totalorder %s255_s28, 0  ;;  %p1281_p4 = por %p275_p1, %p274_p13 }
  0x26   : > { %p371_p5 = scmp.lt.s32.totalorder %s1167_s22, 3 }
  0x27   : > { %s1432_s29 = scalar_select %p1281_p4, 1, 0 }
  0x28   : > { %s1287_s30 = scalar_select %p256_p3, %s1155_s19, %s258_s26  }
  0x29   : > { %1433 = sst [smem:[#allocation13_spill]] %s1432_s29  ;;  %p372_p6 = pnand %p886_p2, %p371_p5 }
  0x2a   : > { %1434 = sst [smem:[#allocation14_spill]] %s1287_s30  ;;  %s1423_s10 = sand.u32 (!%p372_p6), 1, %s1151_s18  }
  0x2b   : > { %375 = sbr.rel (%p372_p6) target bundleno = 638 (0x27e), region = 48  ;;  %s434_s11 = sld [smem:[#allocation5 + %s1159_s20]] (!%p372_p6) }
  0x2c   : > { %s1293_s12 = sshll.u32 (!%p372_p6), %s1423_s10, 3  ;;  %s460_s13 = sld [smem:[#allocation5 + %s1159_s20]] (!%p372_p6) }
  0x2d   : > { %s440_s14 = sld [smem:[#allocation4 + %s1159_s20]] (!%p372_p6)  ;;  %p483_p7 = scmp.lt.s32.totalorder (!%p372_p6), %s1159_s20, 1 }
  0x2e   : > { %s1301_s15 = sld [smem:[#allocation5 + %s1159_s20]] (!%p372_p6)  ;;  %s433_s26 = scalar_lea.vmem (!%p372_p6), [#allocation6], %s1293_s12 }
  0x2f   : > { %s466_s0 = sld [smem:[#allocation4 + %s1159_s20]] (!%p372_p6) }
  0x30   : > { %vm496_vm0 = vcmask 261120   ;;  %v1171_v0 = vmov 0.0   ;;  %s484_s16 = scalar_select %p483_p7, %s1159_s20, 1 }
  0x31   : > { %497 = vst.msk [vmem:[#allocation2] sm:$0xff] %vm496_vm0, %v1171_v0  ;;  %s888_s17 = sadd.s32 4294967295, %s434_s11 }
  0x32   : > { %p436_p8 = scmp.gt.s32.totalorder %s888_s17, 0  ;;  %s897_s23 = sshll.u32 %s484_s16, 2 }
  0x33   : > { %s892_s24 = sadd.s32 4294967295, %s460_s13  ;;  %s1308_s10 = scalar_lea.vmem %s1416_s4, %s897_s23 }
  0x34   : > { %s1447_s17 = smov (!%p436_p8, %s888_s17), 0  ;;  %p462_p9 = scmp.gt.s32.totalorder %s892_s24, 0 }
  0x35   : > { %s898_s25 = sshll.u32 %s484_s16, 3  ;;  %s1449_s17 = smov (%p436_p8, %s1447_s17), 0 }
  0x36   : > { %s1451_s24 = smov (!%p462_p9, %s892_s24), 0  ;;  %s441_s21 = sadd.s32 %s440_s14, %s1449_s17 }
  0x37   : > { %s1313_s11 = scalar_lea.vmem %s1417_s5, %s898_s25  ;;  %p442_p10 = scmp.lt.s32.totalorder %s441_s21, 0 }
  0x38   : > { %s1453_s24 = smov (%p462_p9, %s1451_s24), 0  ;;  %p900_p13 = scmp.le.s32.totalorder %s1301_s15, 0 }
  0x39   : > { %s1455_s21 = smov (!%p442_p10, %s441_s21), 0  ;;  %s467_s13 = sadd.s32 %s466_s0, %s1453_s24 }
  0x3a   : > { %s890_s29 = sshll.u32 %s1455_s21, 4  ;;  %p468_p11 = scmp.lt.s32.totalorder %s467_s13, 0 }
  0x3b   : > { %p445_p12 = scmp.lt.s32.totalorder %s890_s29, 15  ;;  %502 = sbr.rel (%p900_p13) target bundleno = 296 (0x128), region = 56 }
  0x3c   : > { %s1457_s13 = smov (!%p468_p11, %s467_s13), 0  ;;  %s901_s21 = sshll.u32 (!%p900_p13), %s1159_s20, 3 }
  0x3d   : > { %s1459_s29 = smov (!%p445_p12, %s890_s29), 15  ;;  %s1461_s13 = smov (!%p468_p11, %s1457_s13), 0 }
  0x3e   : > { %s891_s16 = sshll.u32 %s1459_s29, 2  ;;  %s472_s30 = scalar_lea.vmem %s1415_s3, %s1461_s13 }
  0x3f   : > { %s1320_s17 = scalar_lea.vmem %s1414_s2, %s891_s16 }
  0x40   : > { %v1053_v1 = vld [vmem:[%s1320_s17 + $0x38] sm:$0xff]   ;;  %v1172_v2 = vmov 0.0   ;;  %v1054_v3 = vld [vmem:[%s1320_s17 + $0x30] sm:$0xff]   ;;  %vm1173_vm1 = vmmov 0   ;;  %v1055_v4 = vld [vmem:[%s1320_s17 + $0x28] sm:$0xff]   ;;  %v504_v7 = vlaneseq  ;;  %v506_v10 = vstv %s901_s21 }
  0x41   : > { %956 = vmatprep.subr.bf16.mxu0 %v1172_v2  ;;  %972 = vmatprep.mubr.msk.bf16.mxu0 %vm1173_vm1, %v1172_v2  ;;  %v1056_v5 = vld [vmem:[%s1320_s17 + $0x20] sm:$0xff]   ;;  %v1057_v6 = vld [vmem:[%s1320_s17 + $0x18] sm:$0xff]   ;;  %v1058_v8 = vld [vmem:[%s1320_s17 + $0x10] sm:$0xff]   ;;  %v1174_v15 = vmov 1.0|1.0  }
  0x42   : > { %957 = vmatpush3.bf16.msra.mxu0 %v1053_v1  ;;  %v505_v9 = vshrl.u32 %v504_v7, 7  ;;  %v1059_v11 = vld [vmem:[%s1320_s17 + $0x8] sm:$0xff]   ;;  %v902_v13 = vld [vmem:[%s472_s30] ss:$0 sm:$0xff] }
  0x43   : > { %958 = vmatprep.subr.bf16.mxu0 %v1172_v2  ;;  %v1060_v14 = vld [vmem:[%s1320_s17] sm:$0xff]  }
  0x44   : > { %v507_v12 = vadd.s32 %v506_v10, %v505_v9  ;;  %v517_v16 = vld [vmem:[#allocation2] sm:$0xff] }
  0x46   : > { %959 = vmatpush3.bf16.msra.mxu0 %v1054_v3  ;;  %vm513_vm2 = vcmp.eq.s32.totalorder %v507_v12, %v902_v13 }
  0x47   : > { %960 = vmatprep.subr.bf16.mxu0 %v1172_v2  ;;  %vm912_vm3 = vmpackc.low %vm513_vm2, %vm513_vm2 }
  0x4a   : > { %961 = vmatpush3.bf16.msra.mxu0 %v1055_v4 }
  0x4b   : > { %962 = vmatprep.subr.bf16.mxu0 %v1172_v2 }
  0x4e   : > { %963 = vmatpush3.bf16.msra.mxu0 %v1056_v5 }
  0x4f   : > { %964 = vmatprep.subr.bf16.mxu0 %v1172_v2 }
  0x52   : > { %965 = vmatpush3.bf16.msra.mxu0 %v1057_v6 }
  0x53   : > { %966 = vmatprep.subr.bf16.mxu0 %v1172_v2 }
  0x56   : > { %967 = vmatpush3.bf16.msra.mxu0 %v1058_v8 }
  0x57   : > { %968 = vmatprep.subr.bf16.mxu0 %v1172_v2 }
  0x5a   : > { %969 = vmatpush3.bf16.msra.mxu0 %v1059_v11 }
  0x5b   : > { %970 = vmatprep.subr.bf16.mxu0 %v1172_v2 }
  0x5e   : > { %971 = vmatpush3.bf16.msra.mxu0 %v1060_v14 }
  0x61   : > { %973 = vmatmul.mubr.msk.bf16.vlgmr.msra.gmra.mxu0 %vm912_vm3, %v1174_v15 }
 0x121   : > { %v616_v17 = vpop.f32.mrf.mxu0 }
 0x122   : > { %v622_v18 = vadd.f32 %v616_v17, %v517_v16 }
 0x123   : > { %v974_v19 = vpop.f32.mrf.mxu0 }
 0x124   : > { %624 = vst.msk [vmem:[#allocation2] sm:$0xff] %vm496_vm0, %v622_v18 }
 0x125   : > { %v619_v20 = vpop.f32.mrf.mxu0 }
 0x127   : > { %v975_v21 = vpop.f32.mrf.mxu0 }
 0x128 PF: > { %v629_v22 = vld [vmem:[%s1313_s11] sm:$0xff]  ;;  %984 = vmatprep.subr.bf16.mxu1 %v1171_v0  ;;  %976 = vmatprep.subr.bf16.mxu0 %v1171_v0  ;;  %v1175_v23 = vmov 0   ;;  %v1063_v25 = vld [vmem:[%s1419_s7 + $0x8] sm:$0xff]   ;;  %vm1176_vm4 = vmmov 0   ;;  %vm706_vm5 = vcmask 130048   ;;  %s921_s14 = sshll.u32 %s1159_s20, 7 }
 0x129   : > { %1061 = vset.pattern.permute.xlu0 %v1175_v23  ;;  %v1062_v24 = vld [vmem:[%s1418_s6] sm:$0xff]   ;;  %986 = vmatprep.mubr.msk.bf16.mxu1 %vm1176_vm4, %v1171_v0  ;;  %s774_s17 = sshll.u32 %s433_s26, 4  ;;  %s1369_s30 = scalar_lea.hbm %s1421_s9, %s921_s14  ;;  %s775_s17 = int_to_ptr.vmem [resolvable:$true] %s774_s17 }
 0x12a   : > { %632 = vperm.xlu0 %1061, %v629_v22   ;;  %v636_v26 = vld [vmem:[%s1308_s10] sm:$0xf]  ;;  %985 = vmatpush3.bf16.msra.mxu1 %v1062_v24  ;;  %s1435_s21 = sand.u32 1, %s1151_s18   ;;  %s1089_s15 = scalar_lea.vmem %s775_s17, 128 }
 0x12b   : > { %980 = vmatprep.mubr.msk.bf16.mxu0 %vm1176_vm4, %v1171_v0  ;;  %977 = vmatpush3.bf16.msra.mxu0 %v1063_v25  ;;  %v1064_v27 = vld [vmem:[%s1419_s7] sm:$0xff]   ;;  %s761_s29 = scalar_lea.sflag [#allocation7], %s1435_s21  ;;  %p1090_p1 = scmp.ne.s32.totalorder %s775_s17, %s1089_s15 }
 0x12c   : > { %978 = vmatprep.subr.bf16.mxu0 %v1171_v0  ;;  %v628_v28 = vld [vmem:[#allocation2] sm:$0xff]  ;;  %s1177_s20 = smov [#allocation6]  }
 0x12d   : > { %987 = vmatmul.mubr.msk.bf16.vlgmr.msra.gmra.mxu1 %vm706_vm5, %v636_v26  ;;  %v919_v37 = vld [vmem:[%s1420_s8] ss:$0 sm:$0xff]  ;;  %p1091_p2 = pnand %p1090_p1, %p1274_p0  ;;  %s1093_s0 = sshll.u32 %s1177_s20, 4  ;;  %s1094_s0 = int_to_ptr.vmem [resolvable:$false] %s1093_s0 }
 0x12e   : > { %s1095_s24 = scalar_lea.vmem %s1094_s0, 256  ;;  %p1096_p5 = scmp.lt.s32.totalorder %s775_s17, %s1094_s0 }
 0x12f   : > { %979 = vmatpush3.bf16.msra.mxu0 %v1064_v27  ;;  %p1092_p3 = pneg %p1091_p2  ;;  %p1097_p6 = scmp.lt.s32.totalorder %s1095_s24, %s1089_s15 }
 0x131   : > { %p1098_p7 = por %p1097_p6, %p1096_p5 }
 0x133   : > { %p1099_p8 = pnand %p1098_p7, %p1092_p3 }
 0x1a5   : > { %v633_v29 = vpop.permute.xlu0 %632 }
 0x1a6   : > { %v635_v30 = vmul.f32 %v633_v29, %v628_v28 }
 0x1a8   : > { %v639_v31 = vpack.c.bf16 %v635_v30, %v635_v30 }
 0x1aa   : > { %981 = vmatmul.mubr.msk.bf16.vlgmr.msra.gmra.mxu0 %vm496_vm0, %v639_v31 }
 0x1ed   : > { %v744_v32 = vpop.f32.mrf.mxu1 }
 0x1ef   : > { %v988_v33 = vpop.f32.mrf.mxu1 }
 0x1f1   : > { %v747_v34 = vpop.f32.mrf.mxu1 }
 0x1f3   : > { %v989_v35 = vpop.f32.mrf.mxu1 }
 0x26a   : > { %v694_v36 = vpop.f32.mrf.mxu0 }
 0x26b   : > { %v745_v38 = vadd.f32 %v744_v32, %v694_v36 }
 0x26c   : > { %v982_v39 = vpop.f32.mrf.mxu0 }
 0x26d   : > { %v757_v40 = vadd.f32 %v919_v37, %v745_v38 }
 0x26e   : > { %v697_v41 = vpop.f32.mrf.mxu0 }
 0x26f   : > { %v758_v42 = vmax.f32 %v757_v40, 0.0 }
 0x270   : > { %v983_v43 = vpop.f32.mrf.mxu0 }
 0x271   : > { %759 = vst [vmem:[%s433_s26] sm:$0xff] %v758_v42 }
 0x272   : > { %1102 = shalt.err (!%p1099_p8)
}
 0x273   : > { %s1103_s12 = scalar_lea.hbm %s1369_s30, 128  ;;  %s1107_s13 = scalar_lea.hbm %s1421_s9, 256 }
 0x274   : > { %p1104_p9 = scmp.ne.s32.totalorder %s1369_s30, %s1103_s12  ;;  %p1108_p12 = scmp.lt.s32.totalorder %s1369_s30, %s1421_s9 }
 0x275   : > { %p1109_p13 = scmp.lt.s32.totalorder %s1107_s13, %s1103_s12 }
 0x276   : > { %p1105_p10 = pnand %p1104_p9, %p1274_p0 }
 0x277   : > { %p1110_p1 = por %p1109_p13, %p1108_p12 }
 0x278   : > { %p1106_p11 = pneg %p1105_p10 }
 0x27a   : > { %p1111_p2 = pnand %p1110_p1, %p1106_p11 }
 0x27c   : > { %1114 = shalt.err (!%p1111_p2)
}
 0x27d   : > { %990 = dma.vmem_to_hbm [thread:$0]  (%p1274_p0), %s775_s17, 128, %s1369_s30, %s761_s29  }
 0x27e PF: > { %p996_p3 = scmp.ge.s32.totalorder %s1167_s22, 2  ;;  %s786_s23 = sand.u32 1, %s1147_s1  }
 0x27f   : > { %s787_s14 = scalar_lea.sflag [#allocation7], %s786_s23 }
 0x280   : > { %p993_p5 = pnand %p996_p3, %p1281_p4 }
 0x282   : > { %p994_p6 = pneg %p993_p5 }
 0x284   : > { %1142 = dma.done.wait (%p994_p6), %s787_s14, 128  }
 0x285   : > { %1144 = vsyncadd (%p994_p6), %s787_s14, 4294967168  ;;  %s32_s22 = sadd.s32 1, %s1167_s22   ;;  %s1437_s19 = sld [smem:[#allocation10_spill]] }
 0x286   : > { %p29_p7 = scmp.ge.s32.totalorder %s32_s22, 4   ;;  %s1438_s27 = sld [smem:[#allocation14_spill]] }
 0x287   : > { %s1439_s20 = sld [smem:[#allocation11_spill]]  ;;  %s1441_s1 = smov %s1151_s18 }
 0x288   : > { %s1440_s21 = sld [smem:[#allocation12_spill]]  ;;  %31 = sbr.rel (!%p29_p7) target bundleno = 29 (0x1d), region = 104 }
 0x28b   : > { %s1442_s18 = smov %s1437_s19 }
 0x28c   : > { %s1443_s19 = smov %s1438_s27 }
 0x28d   :  { %792 = vsyncpa [#allocation7], 1 }
 0x28e   :  { %794 = vsyncpa [#allocation7 + $0x1], 1 }

</bundles_post_ra>
